<compile_context>
chip_gen: v6e
topology: v6e:2x2x1
jax: 0.10.0
libtpu: 0.0.40
codegen_flags: <defaults>
</compile_context>

<pallas_src>
import functools
from math import sqrt

import jax
import jax.numpy as jnp
import numpy as np
from jax.experimental import pallas as pl
from jax.experimental.pallas import tpu as pltpu

D = 5                    # feature dim of the 5-class "direction" vectors
DPAD = 8                 # sublane-padded feature dim
TILE_LANES = 32 * 1024   # batch elements per grid step (multiple of 128)

# deterministic parameter from CustomLoss.__init__ (self.weight).
# self.distance is defined in __init__ but never used in forward() -> omitted.
_W = np.array(
    [[-0.6, 0.0, 0.0, -0.8, 0.0],
     [0.0, -sqrt(2) / 2, 0.5, -0.5, 0.0],
     [0.0, 0.0, 1.0, 0.0, 0.0],
     [0.0, sqrt(2) / 2, 0.5, 0.5, 0.0],
     [0.0, 0.0, 0.0, 0.8, 0.6]],
    dtype=np.float32,
)
# nonzero entries per output row -> scaled-row adds inside the kernel
_W_ROWS = tuple(
    tuple((j, float(_W[k, j])) for j in range(D) if _W[k, j] != 0.0)
    for k in range(D)
)


def _apply_weight(rows):
    """rows: list of D arrays (1, TB).  Returns W @ x as a list of D (1, TB) rows."""
    out = []
    for k in range(D):
        acc = None
        for j, w in _W_ROWS[k]:
            term = w * rows[j]
            acc = term if acc is None else acc + term
        out.append(acc)
    return out


def _loss_kernel(o_ref, t_ref, out_ref, *, batch):
    # o_ref / t_ref: (DPAD, TB) f32 -- features on sublanes 0..4, batch along lanes.
    # out_ref:       (1, TB)    f32 -- per-batch-element exp(-cos); 0 on padded lanes.
    tb = out_ref.shape[1]

    o_rows = [o_ref[k:k + 1, :] for k in range(D)]
    t_rows = [t_ref[k:k + 1, :] for k in range(D)]

    eo = _apply_weight(o_rows)   # err_multi[i] = W @ output[i], laid out per lane
    et = _apply_weight(t_rows)   # true_target[i] = W @ target[i]

    num = eo[0] * et[0]
    so = eo[0] * eo[0]
    st = et[0] * et[0]
    for k in range(1, D):
        num = num + eo[k] * et[k]
        so = so + eo[k] * eo[k]
        st = st + et[k] * et[k]

    # cos = num / (|eo| * |et|) via a single EUP rsqrt; then exp(-cos).
    cos = num * jax.lax.rsqrt(so * st)
    per_row = jnp.exp(-cos)

    # zero out padded tail lanes so the wrapper-side sum is exact
    lane = jax.lax.broadcasted_iota(jnp.int32, (1, tb), 1)
    gidx = pl.program_id(0) * tb + lane
    out_ref[...] = jnp.where(gidx < batch, per_row, 0.0)


def custom_loss(output, target, *, tile_lanes=TILE_LANES):
    assert output.shape == target.shape, "the size of output should match the target"
    B, d = output.shape
    assert d == D

    b_aligned = ((B + 127) // 128) * 128
    tb = min(tile_lanes, b_aligned)          # lanes per tile, multiple of 128
    num_tiles = pl.cdiv(B, tb)
    b_pad = num_tiles * tb

    # sublane-padded, transposed layout: (8, B_pad); rows 0..4 carry the 5 features.
    o_t = jnp.zeros((DPAD, b_pad), jnp.float32).at[:D, :B].set(
        output.astype(jnp.float32).T)
    t_t = jnp.zeros((DPAD, b_pad), jnp.float32).at[:D, :B].set(
        target.astype(jnp.float32).T)

    partial = pl.pallas_call(
        functools.partial(_loss_kernel, batch=B),
        out_shape=jax.ShapeDtypeStruct((1, b_pad), jnp.float32),
        grid=(num_tiles,),
        in_specs=[
            pl.BlockSpec((DPAD, tb), lambda i: (0, i)),
            pl.BlockSpec((DPAD, tb), lambda i: (0, i)),
        ],
        out_specs=pl.BlockSpec((1, tb), lambda i: (0, i)),
        compiler_params=pltpu.CompilerParams(
            dimension_semantics=("parallel",),          # megacore on v7x
            vmem_limit_bytes=32 * 1024 * 1024,
        ),
    )(o_t, t_t)

    # divide by the GLOBAL batch size (tail lanes were masked to 0 in-kernel)
    return jnp.sum(partial) / B


def _reference_loss(output, target):
    # pure-JAX reference of the PyTorch forward, for a sanity check
    w = jnp.asarray(_W)
    eo = output.astype(jnp.float32) @ w.T
    et = target.astype(jnp.float32) @ w.T
    cos = jnp.sum(eo * et, axis=1) / (
        jnp.linalg.norm(eo, axis=1) * jnp.linalg.norm(et, axis=1))
    return jnp.sum(jnp.exp(-cos)) / output.shape[0]


if __name__ == "__main__":
    key = jax.random.PRNGKey(0)

    for B in (8, 200):   # small shapes; second case exercises lane-padding mask
        k1, k2 = jax.random.split(jax.random.fold_in(key, B))
        output = jax.random.normal(k1, (B, D), dtype=jnp.float32)
        # make "target" look like class-direction vectors plus a little noise
        target = jax.nn.one_hot(
            jax.random.randint(k2, (B,), 0, D), D, dtype=jnp.float32)
        target = target + 0.05 * jax.random.normal(k2, (B, D), dtype=jnp.float32)

        loss = custom_loss(output, target)
        jax.block_until_ready(loss)

        ref = _reference_loss(output, target)
        assert jnp.allclose(loss, ref, rtol=1e-3, atol=1e-5), (B, loss, ref)

    print("KERNEL_OK")
</pallas_src>

<mosaic_0001>
module attributes {stable_mosaic.version = 11 : i64} {
  func.func @_loss_kernel(%arg0: i32, %arg1: memref<8x128xf32, #tpu.memory_space<vmem>>, %arg2: memref<8x128xf32, #tpu.memory_space<vmem>>, %arg3: memref<1x128xf32, #tpu.memory_space<vmem>>) attributes {dimension_semantics = [#tpu.dimension_semantics<parallel>], iteration_bounds = array<i64: 1>, scalar_prefetch = 0 : i64, scratch_operands = 0 : i64, tpu.core_type = #tpu.core_type<tc>, window_params = [{transform_indices = @transform_0, window_bounds = array<i64: 8, 128>}, {transform_indices = @transform_1, window_bounds = array<i64: 8, 128>}, {transform_indices = @transform_2, window_bounds = array<i64: 1, 128>}]} {
    %c0 = arith.constant 0 : index
    %c0_0 = arith.constant 0 : index
    %0 = vector.load %arg1[%c0, %c0_0] : memref<8x128xf32, #tpu.memory_space<vmem>>, vector<1x128xf32>
    %c1 = arith.constant 1 : index
    %c0_1 = arith.constant 0 : index
    %1 = vector.load %arg1[%c1, %c0_1] : memref<8x128xf32, #tpu.memory_space<vmem>>, vector<1x128xf32>
    %c2 = arith.constant 2 : index
    %c0_2 = arith.constant 0 : index
    %2 = vector.load %arg1[%c2, %c0_2] : memref<8x128xf32, #tpu.memory_space<vmem>>, vector<1x128xf32>
    %c3 = arith.constant 3 : index
    %c0_3 = arith.constant 0 : index
    %3 = vector.load %arg1[%c3, %c0_3] : memref<8x128xf32, #tpu.memory_space<vmem>>, vector<1x128xf32>
    %c4 = arith.constant 4 : index
    %c0_4 = arith.constant 0 : index
    %4 = vector.load %arg1[%c4, %c0_4] : memref<8x128xf32, #tpu.memory_space<vmem>>, vector<1x128xf32>
    %c0_5 = arith.constant 0 : index
    %c0_6 = arith.constant 0 : index
    %5 = vector.load %arg2[%c0_5, %c0_6] : memref<8x128xf32, #tpu.memory_space<vmem>>, vector<1x128xf32>
    %c1_7 = arith.constant 1 : index
    %c0_8 = arith.constant 0 : index
    %6 = vector.load %arg2[%c1_7, %c0_8] : memref<8x128xf32, #tpu.memory_space<vmem>>, vector<1x128xf32>
    %c2_9 = arith.constant 2 : index
    %c0_10 = arith.constant 0 : index
    %7 = vector.load %arg2[%c2_9, %c0_10] : memref<8x128xf32, #tpu.memory_space<vmem>>, vector<1x128xf32>
    %c3_11 = arith.constant 3 : index
    %c0_12 = arith.constant 0 : index
    %8 = vector.load %arg2[%c3_11, %c0_12] : memref<8x128xf32, #tpu.memory_space<vmem>>, vector<1x128xf32>
    %c4_13 = arith.constant 4 : index
    %c0_14 = arith.constant 0 : index
    %9 = vector.load %arg2[%c4_13, %c0_14] : memref<8x128xf32, #tpu.memory_space<vmem>>, vector<1x128xf32>
    %cst = arith.constant -6.000000e-01 : f32
    %10 = vector.broadcast %cst : f32 to vector<1x128xf32>
    %11 = arith.mulf %10, %0 : vector<1x128xf32>
    %cst_15 = arith.constant -8.000000e-01 : f32
    %12 = vector.broadcast %cst_15 : f32 to vector<1x128xf32>
    %13 = arith.mulf %12, %3 : vector<1x128xf32>
    %14 = arith.addf %11, %13 : vector<1x128xf32>
    %cst_16 = arith.constant -0.707106769 : f32
    %15 = vector.broadcast %cst_16 : f32 to vector<1x128xf32>
    %16 = arith.mulf %15, %1 : vector<1x128xf32>
    %cst_17 = arith.constant 5.000000e-01 : f32
    %17 = vector.broadcast %cst_17 : f32 to vector<1x128xf32>
    %18 = arith.mulf %17, %2 : vector<1x128xf32>
    %19 = arith.addf %16, %18 : vector<1x128xf32>
    %cst_18 = arith.constant -5.000000e-01 : f32
    %20 = vector.broadcast %cst_18 : f32 to vector<1x128xf32>
    %21 = arith.mulf %20, %3 : vector<1x128xf32>
    %22 = arith.addf %19, %21 : vector<1x128xf32>
    %cst_19 = arith.constant 1.000000e+00 : f32
    %23 = vector.broadcast %cst_19 : f32 to vector<1x128xf32>
    %24 = arith.mulf %23, %2 : vector<1x128xf32>
    %cst_20 = arith.constant 0.707106769 : f32
    %25 = vector.broadcast %cst_20 : f32 to vector<1x128xf32>
    %26 = arith.mulf %25, %1 : vector<1x128xf32>
    %cst_21 = arith.constant 5.000000e-01 : f32
    %27 = vector.broadcast %cst_21 : f32 to vector<1x128xf32>
    %28 = arith.mulf %27, %2 : vector<1x128xf32>
    %29 = arith.addf %26, %28 : vector<1x128xf32>
    %cst_22 = arith.constant 5.000000e-01 : f32
    %30 = vector.broadcast %cst_22 : f32 to vector<1x128xf32>
    %31 = arith.mulf %30, %3 : vector<1x128xf32>
    %32 = arith.addf %29, %31 : vector<1x128xf32>
    %cst_23 = arith.constant 8.000000e-01 : f32
    %33 = vector.broadcast %cst_23 : f32 to vector<1x128xf32>
    %34 = arith.mulf %33, %3 : vector<1x128xf32>
    %cst_24 = arith.constant 6.000000e-01 : f32
    %35 = vector.broadcast %cst_24 : f32 to vector<1x128xf32>
    %36 = arith.mulf %35, %4 : vector<1x128xf32>
    %37 = arith.addf %34, %36 : vector<1x128xf32>
    %cst_25 = arith.constant -6.000000e-01 : f32
    %38 = vector.broadcast %cst_25 : f32 to vector<1x128xf32>
    %39 = arith.mulf %38, %5 : vector<1x128xf32>
    %cst_26 = arith.constant -8.000000e-01 : f32
    %40 = vector.broadcast %cst_26 : f32 to vector<1x128xf32>
    %41 = arith.mulf %40, %8 : vector<1x128xf32>
    %42 = arith.addf %39, %41 : vector<1x128xf32>
    %cst_27 = arith.constant -0.707106769 : f32
    %43 = vector.broadcast %cst_27 : f32 to vector<1x128xf32>
    %44 = arith.mulf %43, %6 : vector<1x128xf32>
    %cst_28 = arith.constant 5.000000e-01 : f32
    %45 = vector.broadcast %cst_28 : f32 to vector<1x128xf32>
    %46 = arith.mulf %45, %7 : vector<1x128xf32>
    %47 = arith.addf %44, %46 : vector<1x128xf32>
    %cst_29 = arith.constant -5.000000e-01 : f32
    %48 = vector.broadcast %cst_29 : f32 to vector<1x128xf32>
    %49 = arith.mulf %48, %8 : vector<1x128xf32>
    %50 = arith.addf %47, %49 : vector<1x128xf32>
    %cst_30 = arith.constant 1.000000e+00 : f32
    %51 = vector.broadcast %cst_30 : f32 to vector<1x128xf32>
    %52 = arith.mulf %51, %7 : vector<1x128xf32>
    %cst_31 = arith.constant 0.707106769 : f32
    %53 = vector.broadcast %cst_31 : f32 to vector<1x128xf32>
    %54 = arith.mulf %53, %6 : vector<1x128xf32>
    %cst_32 = arith.constant 5.000000e-01 : f32
    %55 = vector.broadcast %cst_32 : f32 to vector<1x128xf32>
    %56 = arith.mulf %55, %7 : vector<1x128xf32>
    %57 = arith.addf %54, %56 : vector<1x128xf32>
    %cst_33 = arith.constant 5.000000e-01 : f32
    %58 = vector.broadcast %cst_33 : f32 to vector<1x128xf32>
    %59 = arith.mulf %58, %8 : vector<1x128xf32>
    %60 = arith.addf %57, %59 : vector<1x128xf32>
    %cst_34 = arith.constant 8.000000e-01 : f32
    %61 = vector.broadcast %cst_34 : f32 to vector<1x128xf32>
    %62 = arith.mulf %61, %8 : vector<1x128xf32>
    %cst_35 = arith.constant 6.000000e-01 : f32
    %63 = vector.broadcast %cst_35 : f32 to vector<1x128xf32>
    %64 = arith.mulf %63, %9 : vector<1x128xf32>
    %65 = arith.addf %62, %64 : vector<1x128xf32>
    %66 = arith.mulf %14, %42 : vector<1x128xf32>
    %67 = arith.mulf %14, %14 : vector<1x128xf32>
    %68 = arith.mulf %42, %42 : vector<1x128xf32>
    %69 = arith.mulf %22, %50 : vector<1x128xf32>
    %70 = arith.addf %66, %69 : vector<1x128xf32>
    %71 = arith.mulf %22, %22 : vector<1x128xf32>
    %72 = arith.addf %67, %71 : vector<1x128xf32>
    %73 = arith.mulf %50, %50 : vector<1x128xf32>
    %74 = arith.addf %68, %73 : vector<1x128xf32>
    %75 = arith.mulf %24, %52 : vector<1x128xf32>
    %76 = arith.addf %70, %75 : vector<1x128xf32>
    %77 = arith.mulf %24, %24 : vector<1x128xf32>
    %78 = arith.addf %72, %77 : vector<1x128xf32>
    %79 = arith.mulf %52, %52 : vector<1x128xf32>
    %80 = arith.addf %74, %79 : vector<1x128xf32>
    %81 = arith.mulf %32, %60 : vector<1x128xf32>
    %82 = arith.addf %76, %81 : vector<1x128xf32>
    %83 = arith.mulf %32, %32 : vector<1x128xf32>
    %84 = arith.addf %78, %83 : vector<1x128xf32>
    %85 = arith.mulf %60, %60 : vector<1x128xf32>
    %86 = arith.addf %80, %85 : vector<1x128xf32>
    %87 = arith.mulf %37, %65 : vector<1x128xf32>
    %88 = arith.addf %82, %87 : vector<1x128xf32>
    %89 = arith.mulf %37, %37 : vector<1x128xf32>
    %90 = arith.addf %84, %89 : vector<1x128xf32>
    %91 = arith.mulf %65, %65 : vector<1x128xf32>
    %92 = arith.addf %86, %91 : vector<1x128xf32>
    %93 = arith.mulf %90, %92 : vector<1x128xf32>
    %94 = math.rsqrt %93 : vector<1x128xf32>
    %95 = arith.mulf %88, %94 : vector<1x128xf32>
    %cst_36 = arith.constant 0.000000e+00 : f32
    %96 = vector.broadcast %cst_36 : f32 to vector<1x128xf32>
    %97 = arith.subf %96, %95 : vector<1x128xf32>
    %98 = math.exp %97 : vector<1x128xf32>
    %99 = tpu.iota {dimensions = array<i32: 1>} : vector<1x128xi32>
    %c128_i32 = arith.constant 128 : i32
    %100 = arith.muli %arg0, %c128_i32 : i32
    %101 = vector.broadcast %100 : i32 to vector<1x128xi32>
    %102 = arith.addi %101, %99 : vector<1x128xi32>
    %c8_i32 = arith.constant 8 : i32
    %103 = vector.broadcast %c8_i32 : i32 to vector<1x128xi32>
    %104 = arith.cmpi slt, %102, %103 : vector<1x128xi32>
    %cst_37 = arith.constant 0.000000e+00 : f32
    %105 = vector.broadcast %cst_37 : f32 to vector<1x128xf32>
    %106 = arith.select %104, %98, %105 : vector<1x128xi1>, vector<1x128xf32>
    %c0_38 = arith.constant 0 : index
    %c0_39 = arith.constant 0 : index
    %107 = vector.load %arg3[%c0_38, %c0_39] : memref<1x128xf32, #tpu.memory_space<vmem>>, vector<1x128xf32>
    tpu.vector_store %arg3[%c0_38, %c0_39], %106 {strides = array<i32>} : memref<1x128xf32, #tpu.memory_space<vmem>>, vector<1x128xf32>,
    return
  }
  func.func @transform_0(%arg0: i32) -> (i32, i32) {
    %c0_i32 = arith.constant 0 : i32
    %c0_i32_0 = arith.constant 0 : i32
    return %c0_i32, %arg0 : i32, i32
  }
  func.func @transform_1(%arg0: i32) -> (i32, i32) {
    %c0_i32 = arith.constant 0 : i32
    %c0_i32_0 = arith.constant 0 : i32
    return %c0_i32, %arg0 : i32, i32
  }
  func.func @transform_2(%arg0: i32) -> (i32, i32) {
    %c0_i32 = arith.constant 0 : i32
    %c0_i32_0 = arith.constant 0 : i32
    return %c0_i32, %arg0 : i32, i32
  }
}

</mosaic_0001>

<bundles_post_ra>
// kernel: tpu_custom_call.1
= control target key start
LH: loop header
LB: loop body
LE: loop exit
PB: predicated region body
PF: predicated region fallthrough
CT: control target
= control target key end

     0   :  { %7 = vsyncpa [#allocation3], 0  ;;  %s233_s0 = inlined_call_operand.hbm [shape: f32[8,128], index: 0, kind: input, shape index: {}]   ;;  %s234_s1 = inlined_call_operand.hbm [shape: f32[8,128], index: 1, kind: input, shape index: {}]   ;;  %s235_s2 = inlined_call_operand.hbm [shape: f32[1,128], index: 2, kind: output, shape index: {}]  }
   0x1   :  { %8 = vsyncpa [#allocation6], 0 }
   0x2   :  { %9 = vsyncpa [#allocation4], 0  ;;  %s206_s9 = smov [#allocation2]   ;;  %s207_s11 = smov [#allocation5]  }
   0x3   :  { %s16_s10 = sshll.u32 %s206_s9, 4  ;;  %s26_s12 = sshll.u32 %s207_s11, 4  ;;  %s17_s10 = int_to_ptr.vmem [resolvable:$true] %s16_s10  ;;  %s27_s12 = int_to_ptr.vmem [resolvable:$true] %s26_s12 }
   0x4   :  { %s148_s13 = scalar_lea.vmem %s17_s10, 128  ;;  %p153_p1 = scmp.lt.s32.totalorder %s17_s10, %s17_s10 }
   0x5   :  { %p149_p0 = scmp.ne.s32.totalorder %s17_s10, %s148_s13  ;;  %p154_p2 = scmp.lt.s32.totalorder %s148_s13, %s148_s13 }
   0x7   :  { %p155_p3 = por %p154_p2, %p153_p1 }
   0x9   :  { %p156_p4 = pnand %p155_p3, %p149_p0 }
   0xb   :  { %159 = shalt.err (!%p156_p4)
}
   0xc   :  { %19 = dma.hbm_to_vmem [thread:$0]  %s233_s0, 128, %s17_s10, [#allocation3]  }
   0xd   :  { %s168_s16 = scalar_lea.vmem %s27_s12, 128  ;;  %p173_p6 = scmp.lt.s32.totalorder %s27_s12, %s27_s12 }
   0xe   :  { %p169_p5 = scmp.ne.s32.totalorder %s27_s12, %s168_s16  ;;  %p174_p7 = scmp.lt.s32.totalorder %s168_s16, %s168_s16 }
  0x10   :  { %p175_p8 = por %p174_p7, %p173_p6 }
  0x12   :  { %p176_p9 = pnand %p175_p8, %p169_p5 }
  0x14   :  { %179 = shalt.err (!%p176_p9)
}
  0x15   :  { %29 = dma.hbm_to_vmem [thread:$0]  %s234_s1, 128, %s27_s12, [#allocation6]  }
  0x16   :  { %200 = dma.done.wait [#allocation3], 128  }
  0x17   :  { %201 = vsyncadd [#allocation3], 4294967168 }
  0x18   :  { %202 = dma.done.wait [#allocation6], 128  }
  0x19   :  { %203 = vsyncadd [#allocation6], 4294967168  ;;  %v36_v0 = vld [vmem:[#allocation2] sm:$0x1]  ;;  %v37_v1 = vld [vmem:[#allocation2 + $0x1] sm:$0x1] }
  0x1a   :  { %v38_v2 = vld [vmem:[#allocation2 + $0x2] sm:$0x1]  ;;  %v39_v3 = vld [vmem:[#allocation2 + $0x3] sm:$0x1]  ;;  %v40_v4 = vld [vmem:[#allocation2 + $0x4] sm:$0x1] }
  0x1b   :  { %v41_v5 = vld [vmem:[#allocation5] sm:$0x1]  ;;  %v42_v6 = vld [vmem:[#allocation5 + $0x1] sm:$0x1]  ;;  %v43_v7 = vld [vmem:[#allocation5 + $0x2] sm:$0x1]  ;;  %v87_v37 = vmul.f32 %v38_v2, %v38_v2 }
  0x1c   :  { %v44_v8 = vld [vmem:[#allocation5 + $0x3] sm:$0x1]  ;;  %v46_v9 = vmul.f32 -0.6, %v36_v0  ;;  %v47_v10 = vmul.f32 -0.8, %v39_v3  ;;  %v89_v43 = vmul.f32 %v43_v7, %v43_v7  ;;  %v85_v61 = vmul.f32 %v43_v7, %v38_v2 }
  0x1d   :  { %v49_v11 = vmul.f32 -0.70710677, %v37_v1  ;;  %v50_v12 = vmul.f32 0.5, %v38_v2  ;;  %v52_v13 = vmul.f32 -0.5, %v39_v3  ;;  %v54_v14 = vmul.f32 0.70710677, %v37_v1 }
  0x1e   :  { %v48_v15 = vadd.f32 %v47_v10, %v46_v9  ;;  %v56_v16 = vmul.f32 0.5, %v39_v3  ;;  %v58_v17 = vmul.f32 0.8, %v39_v3  ;;  %v45_v18 = vld [vmem:[#allocation5 + $0x4] sm:$0x1]  ;;  %v65_v25 = vmul.f32 0.5, %v43_v7 }
  0x1f   :  { %v51_v19 = vadd.f32 %v50_v12, %v49_v11  ;;  %v55_v20 = vadd.f32 %v54_v14, %v50_v12  ;;  %v61_v21 = vmul.f32 -0.6, %v41_v5  ;;  %v62_v22 = vmul.f32 -0.8, %v44_v8  ;;  %s208_s0 = smov [#allocation7]  }
  0x20   :  { %v59_v23 = vmul.f32 0.6, %v40_v4  ;;  %v64_v24 = vmul.f32 -0.70710677, %v42_v6  ;;  %v67_v26 = vmul.f32 -0.5, %v44_v8  ;;  %v71_v32 = vmul.f32 0.5, %v44_v8 }
  0x21   :  { %v53_v27 = vadd.f32 %v52_v13, %v51_v19  ;;  %v57_v28 = vadd.f32 %v56_v16, %v55_v20  ;;  %v63_v29 = vadd.f32 %v62_v22, %v61_v21  ;;  %v69_v30 = vmul.f32 0.70710677, %v42_v6  ;;  %s123_s1 = sshll.u32 %s208_s0, 4  ;;  %s124_s1 = int_to_ptr.vmem [resolvable:$true] %s123_s1 }
  0x22   :  { %v66_v31 = vadd.f32 %v65_v25, %v64_v24  ;;  %v73_v33 = vmul.f32 0.8, %v44_v8  ;;  %v74_v34 = vmul.f32 0.6, %v45_v18  ;;  %v77_v36 = vmul.f32 %v48_v15, %v48_v15  ;;  %s180_s19 = scalar_lea.vmem %s124_s1, 16  ;;  %s184_s20 = scalar_lea.vmem %s124_s1, 32 }
  0x23   :  { %v70_v35 = vadd.f32 %v69_v30, %v65_v25  ;;  %v60_v38 = vadd.f32 %v59_v23, %v58_v17  ;;  %v78_v40 = vmul.f32 %v63_v29, %v63_v29  ;;  %v81_v41 = vmul.f32 %v53_v27, %v53_v27  ;;  %p181_p10 = scmp.ne.s32.totalorder %s124_s1, %s180_s19  ;;  %p185_p11 = scmp.lt.s32.totalorder %s124_s1, %s124_s1 }
  0x24   :  { %v68_v39 = vadd.f32 %v67_v26, %v66_v31  ;;  %v75_v44 = vadd.f32 %v74_v34, %v73_v33  ;;  %v93_v47 = vmul.f32 %v57_v28, %v57_v28  ;;  %v76_v55 = vmul.f32 %v63_v29, %v48_v15  ;;  %p186_p12 = scmp.lt.s32.totalorder %s184_s20, %s180_s19 }
  0x25   :  { %v72_v42 = vadd.f32 %v71_v32, %v70_v35  ;;  %v82_v45 = vadd.f32 %v81_v41, %v77_v36  ;;  %v99_v51 = vmul.f32 %v60_v38, %v60_v38  ;;  %v109_v10 = vlaneseq }
  0x26   :  { %v83_v46 = vmul.f32 %v68_v39, %v68_v39  ;;  %v101_v54 = vmul.f32 %v75_v44, %v75_v44  ;;  %v79_v56 = vmul.f32 %v68_v39, %v53_v27  ;;  %v97_v3 = vmul.f32 %v75_v44, %v60_v38  ;;  %p187_p13 = por %p186_p12, %p185_p11 }
  0x27   :  { %v88_v49 = vadd.f32 %v87_v37, %v82_v45  ;;  %v95_v50 = vmul.f32 %v72_v42, %v72_v42  ;;  %v91_v0 = vmul.f32 %v72_v42, %v57_v28  ;;  %v110_v11 = vand.u32 127, %v109_v10 }
  0x28   :  { %v84_v48 = vadd.f32 %v83_v46, %v78_v40  ;;  %v80_v60 = vadd.f32 %v79_v56, %v76_v55  ;;  %p188_p0 = pnand %p187_p13, %p181_p10 }
  0x29   :  { %v94_v53 = vadd.f32 %v93_v47, %v88_v49  ;;  %vm114_vm0 = vcmp.lt.s32.totalorder %v110_v11, 8 }
  0x2a   :  { %v90_v52 = vadd.f32 %v89_v43, %v84_v48  ;;  %v86_v63 = vadd.f32 %v85_v61, %v80_v60 }
  0x2b   :  { %v100_v58 = vadd.f32 %v99_v51, %v94_v53 }
  0x2c   :  { %v96_v57 = vadd.f32 %v95_v50, %v90_v52  ;;  %v92_v1 = vadd.f32 %v91_v0, %v86_v63 }
  0x2e   :  { %v102_v59 = vadd.f32 %v101_v54, %v96_v57  ;;  %v98_v4 = vadd.f32 %v97_v3, %v92_v1 }
  0x30   :  { %v103_v62 = vmul.f32 %v102_v59, %v100_v58 }
  0x32   :  { %136 = vrsqrt.f32 %v103_v62 }
  0x3f   :  { %v137_v5 = vpop.eup %136 }
  0x40   :  { %v105_v6 = vmul.f32 %v137_v5, %v98_v4 }
  0x42   :  { %v106_v8 = vsub.f32 0.0, %v105_v6 }
  0x44   :  { %v107_v9 = vmul.f32 1.442695, %v106_v8 }
  0x46   :  { %138 = vpow2.f32 %v107_v9 }
  0x53   :  { %v139_v12 = vpop.eup %138 }
  0x54   :  { %v115_v2 = vsel %vm114_vm0, %v139_v12, 0.0 }
  0x55   :  { %116 = vst [vmem:[#allocation7] sm:$0x1] %v115_v2 }
  0x56   :  { %191 = shalt.err (!%p188_p0)
}
  0x57   :  { %126 = dma.vmem_to_hbm [thread:$0]  %s124_s1, 16, %s235_s2, [#allocation4]  }
  0x58   :  { %204 = dma.done.wait [#allocation4], 16  }
  0x59   :  { %205 = vsyncadd [#allocation4], 4294967280 }
  0x5a   :  { %130 = vsyncpa [#allocation3], 1 }
  0x5b   :  { %131 = vsyncpa [#allocation6], 1 }
  0x5c   :  { %132 = vsyncpa [#allocation4], 1 }

</bundles_post_ra>
